<compile_context>
chip_gen: v5e
topology: v5e:2x2
jax: 0.10.0
libtpu: 0.0.40
codegen_flags: <defaults>
</compile_context>

<pallas_src>
import functools
import math

import jax
import jax.numpy as jnp
from jax import lax
from jax.experimental import pallas as pl
from jax.experimental.pallas import tpu as pltpu

# Matmul-operand / inter-layer-activation dtype.  Set to jnp.bfloat16 on
# v6e/v7x (2x MXU rate, half the HBM bytes); loosen the allclose tolerance or
# compare against a bf16 reference when doing so.
MATMUL_DTYPE = jnp.float32
_SUBLANE = 16 if MATMUL_DTYPE == jnp.bfloat16 else 8
_LANE = 128


# ------------------------------ tiling helpers --------------------------------

def _choose_tile(dim, cap, align):
    """Tile <= cap, multiple of `align`; a small dim stays one full block."""
    if dim <= cap:
        return dim
    return max((cap // align) * align, align)


def _pad2d(a, rows, cols):
    """Zero-pad a 2-D array up to (rows, cols).  No-op when already sized."""
    pr, pc = rows - a.shape[0], cols - a.shape[1]
    if pr == 0 and pc == 0:
        return a
    return jnp.pad(a, ((0, pr), (0, pc)))


# ----------------------------- Pallas kernels --------------------------------

def _linear_kernel(x_ref, w_ref, b_ref, o_ref, acc_ref, *, activation):
    """Tiled y = x @ w + b (optional fused relu); K is the last grid axis."""
    k = pl.program_id(2)

    @pl.when(k == 0)
    def _():
        acc_ref[...] = jnp.zeros_like(acc_ref)

    acc_ref[...] += jnp.dot(x_ref[...], w_ref[...],
                            preferred_element_type=jnp.float32)

    @pl.when(k == pl.num_programs(2) - 1)
    def _():
        acc_ref[...] += b_ref[...]          # (1, tn) broadcasts over rows
        y = acc_ref[...]
        if activation == "relu":
            y = jnp.maximum(y, 0.0)
        o_ref[...] = y.astype(o_ref.dtype)


def linear(x, w, b, activation=None, tm=256, tn=512, tk=1024):
    """x: (M, K), w: (K, N), b: (1, N) f32 -> (M, N) in MATMUL_DTYPE."""
    M, K = x.shape
    N = w.shape[1]
    tm = _choose_tile(M, tm, _SUBLANE)
    tn = _choose_tile(N, tn, _LANE)
    tk = _choose_tile(K, tk, _LANE)
    Mp = pl.cdiv(M, tm) * tm
    Np = pl.cdiv(N, tn) * tn
    Kp = pl.cdiv(K, tk) * tk
    # cast once, HBM-side (no-op when MATMUL_DTYPE is f32)
    xp = _pad2d(x.astype(MATMUL_DTYPE), Mp, Kp)
    wp = _pad2d(w.astype(MATMUL_DTYPE), Kp, Np)
    bp = _pad2d(b, 1, Np)
    out = pl.pallas_call(
        functools.partial(_linear_kernel, activation=activation),
        out_shape=jax.ShapeDtypeStruct((Mp, Np), MATMUL_DTYPE),
        grid_spec=pltpu.PrefetchScalarGridSpec(
            num_scalar_prefetch=0,
            grid=(Mp // tm, Np // tn, Kp // tk),
            in_specs=[
                pl.BlockSpec((tm, tk), lambda i, j, k: (i, k)),
                pl.BlockSpec((tk, tn), lambda i, j, k: (k, j)),
                pl.BlockSpec((1, tn), lambda i, j, k: (0, j)),
            ],
            out_specs=pl.BlockSpec((tm, tn), lambda i, j, k: (i, j)),
            scratch_shapes=[pltpu.VMEM((tm, tn), jnp.float32)],
        ),
        compiler_params=pltpu.CompilerParams(
            dimension_semantics=("parallel", "parallel", "arbitrary")),
    )(xp, wp, bp)
    return out[:M, :N] if (Mp, Np) != (M, N) else out


def _linear_res_ln_kernel(x_ref, w_ref, b_ref, res_ref, g_ref, beta_ref,
                          o_ref, acc_ref, *, eps):
    """Tiled y = LayerNorm(residual + x @ w + b); add + LN fused in epilogue,
    computed in place through the f32 accumulator."""
    k = pl.program_id(1)

    @pl.when(k == 0)
    def _():
        acc_ref[...] = jnp.zeros_like(acc_ref)

    acc_ref[...] += jnp.dot(x_ref[...], w_ref[...],
                            preferred_element_type=jnp.float32)

    @pl.when(k == pl.num_programs(1) - 1)
    def _():
        acc_ref[...] += b_ref[...] + res_ref[...].astype(jnp.float32)
        mean = jnp.mean(acc_ref[...], axis=-1, keepdims=True)
        acc_ref[...] -= mean                              # centered, in place
        yc = acc_ref[...]
        var = jnp.mean(yc * yc, axis=-1, keepdims=True)   # biased var (torch LN)
        inv = lax.rsqrt(var + eps)
        o_ref[...] = ((yc * inv) * g_ref[...] + beta_ref[...]).astype(o_ref.dtype)


def linear_residual_layernorm(x, w, b, residual, gamma, beta, eps=1e-5,
                              tm=256, tk=1024):
    """LayerNorm(residual + x @ w + b).  N (= model_dim) kept as one block so
    the row-wise LN reduction runs in the matmul epilogue (XLU slot)."""
    M, K = x.shape
    N = w.shape[1]
    tm = _choose_tile(M, tm, _SUBLANE)
    tk = _choose_tile(K, tk, _LANE)
    Mp = pl.cdiv(M, tm) * tm
    Kp = pl.cdiv(K, tk) * tk
    xp = _pad2d(x.astype(MATMUL_DTYPE), Mp, Kp)
    wp = _pad2d(w.astype(MATMUL_DTYPE), Kp, N)
    rp = _pad2d(residual.astype(MATMUL_DTYPE), Mp, N)
    out = pl.pallas_call(
        functools.partial(_linear_res_ln_kernel, eps=eps),
        out_shape=jax.ShapeDtypeStruct((Mp, N), MATMUL_DTYPE),
        grid_spec=pltpu.PrefetchScalarGridSpec(
            num_scalar_prefetch=0,
            grid=(Mp // tm, Kp // tk),
            in_specs=[
                pl.BlockSpec((tm, tk), lambda i, k: (i, k)),
                pl.BlockSpec((tk, N), lambda i, k: (k, 0)),
                pl.BlockSpec((1, N), lambda i, k: (0, 0)),
                pl.BlockSpec((tm, N), lambda i, k: (i, 0)),
                pl.BlockSpec((1, N), lambda i, k: (0, 0)),
                pl.BlockSpec((1, N), lambda i, k: (0, 0)),
            ],
            out_specs=pl.BlockSpec((tm, N), lambda i, k: (i, 0)),
            scratch_shapes=[pltpu.VMEM((tm, N), jnp.float32)],
        ),
        compiler_params=pltpu.CompilerParams(
            dimension_semantics=("parallel", "arbitrary")),
    )(xp, wp, b, rp, gamma, beta)
    return out[:M] if Mp != M else out


def _attn_kernel(x_ref, w_ref, b_ref, o_ref, *, num_heads, head_dim,
                 model_dim, scale):
    """One batch element per grid step.  The qkv in-projection is fused here
    (no (B*S, 3d) HBM round trip); each head writes its output slice directly."""
    qkv = (jnp.dot(x_ref[...], w_ref[...], preferred_element_type=jnp.float32)
           + b_ref[...]).astype(MATMUL_DTYPE)                       # (S, 3d)
    # TODO(synk): for long S, tile query/KV with an online-softmax (flash)
    # formulation and add a head/query "parallel" grid axis (v7x: 2 TCs, 64 MiB
    # VMEM); at the small S here the whole-block form is optimal.
    for h in range(num_heads):
        lo = h * head_dim
        q = qkv[:, lo:lo + head_dim]
        k = qkv[:, model_dim + lo:model_dim + lo + head_dim]
        v = qkv[:, 2 * model_dim + lo:2 * model_dim + lo + head_dim]
        # contract the last dims directly -> no explicit k.T / XLU transpose
        s = lax.dot_general(q, k, (((1,), (1,)), ((), ())),
                            preferred_element_type=jnp.float32) * scale
        m = jnp.max(s, axis=-1, keepdims=True)
        p = jnp.exp(s - m)
        p = p * pl.reciprocal(jnp.sum(p, axis=-1, keepdims=True), approx=True)
        o_h = jnp.dot(p.astype(MATMUL_DTYPE), v,
                      preferred_element_type=jnp.float32)
        # write each head straight into its column slice (no concatenate; only
        # one head's output live at a time)
        o_ref[:, lo:lo + head_dim] = o_h.astype(o_ref.dtype)


def attention_block(h, w, b, num_heads):
    """h: (B, S, d); w: (d, 3d); b: (1, 3d) -> (B, S, d) attention output."""
    B, S, d = h.shape
    dh = d // num_heads
    return pl.pallas_call(
        functools.partial(_attn_kernel, num_heads=num_heads, head_dim=dh,
                          model_dim=d, scale=1.0 / math.sqrt(dh)),
        out_shape=jax.ShapeDtypeStruct((B, S, d), MATMUL_DTYPE),
        grid=(B,),
        in_specs=[
            pl.BlockSpec((None, S, d), lambda bi: (bi, 0, 0)),
            pl.BlockSpec((d, 3 * d), lambda bi: (0, 0)),
            pl.BlockSpec((1, 3 * d), lambda bi: (0, 0)),
        ],
        out_specs=pl.BlockSpec((None, S, d), lambda bi: (bi, 0, 0)),
        compiler_params=pltpu.CompilerParams(dimension_semantics=("parallel",)),
    )(h.astype(MATMUL_DTYPE), w.astype(MATMUL_DTYPE), b)


# --------------------------- parameter initialization ------------------------

def init_params(key, input_dim, model_dim, num_heads, num_layers, dim_ff=2048):
    def dense(k, fan_in, fan_out):
        w = jax.random.normal(k, (fan_in, fan_out), jnp.float32) * 0.05
        b = jnp.zeros((1, fan_out), jnp.float32)
        return w, b

    keys = jax.random.split(key, 2 + 4 * num_layers)
    params = {"model_dim": model_dim, "num_heads": num_heads, "layers": []}
    params["in_w"], params["in_b"] = dense(keys[0], input_dim, model_dim)
    params["out_w"], params["out_b"] = dense(keys[1], model_dim, 1)
    for l in range(num_layers):
        k0, k1, k2, k3 = keys[2 + 4 * l: 6 + 4 * l]
        lp = {}
        lp["in_proj_w"], lp["in_proj_b"] = dense(k0, model_dim, 3 * model_dim)
        lp["out_proj_w"], lp["out_proj_b"] = dense(k1, model_dim, model_dim)
        lp["ff1_w"], lp["ff1_b"] = dense(k2, model_dim, dim_ff)
        lp["ff2_w"], lp["ff2_b"] = dense(k3, dim_ff, model_dim)
        lp["ln1_g"] = jnp.ones((1, model_dim), jnp.float32)
        lp["ln1_b"] = jnp.zeros((1, model_dim), jnp.float32)
        lp["ln2_g"] = jnp.ones((1, model_dim), jnp.float32)
        lp["ln2_b"] = jnp.zeros((1, model_dim), jnp.float32)
        params["layers"].append(lp)
    return params


# ------------------------------ forward pass ----------------------------------

def temporal_transformer_forward(params, x):
    """x: (B, S, input_dim) f32 -> (B, 1) f32 (matches nn.Module.forward)."""
    B, S, _ = x.shape
    d = params["model_dim"]
    H = params["num_heads"]

    h = linear(x.reshape(B * S, -1), params["in_w"], params["in_b"])   # (BS, d)

    # TODO(synk): dropout is identity here (eval-mode forward); no RNG dropout kernel.
    for lp in params["layers"]:
        # --- self-attention block (post-norm); qkv projection fused in-kernel ---
        a = attention_block(h.reshape(B, S, d), lp["in_proj_w"],
                            lp["in_proj_b"], H)                        # (B, S, d)
        h = linear_residual_layernorm(a.reshape(B * S, d),
                                      lp["out_proj_w"], lp["out_proj_b"],
                                      h, lp["ln1_g"], lp["ln1_b"])
        # --- feed-forward block (post-norm) ---
        ff = linear(h, lp["ff1_w"], lp["ff1_b"], activation="relu")    # (BS, dff)
        h = linear_residual_layernorm(ff, lp["ff2_w"], lp["ff2_b"],
                                      h, lp["ln2_g"], lp["ln2_b"])

    last = h.reshape(B, S, d)[:, -1, :].astype(jnp.float32)            # (B, d)
    # Final (B, d) @ (d, 1): a lane-width-1 Pallas output would be all masked
    # stores plus a launch for negligible FLOPs -> leave it to XLA.
    return last @ params["out_w"] + params["out_b"]                    # (B, 1)


# ------------------------------ pure-JAX reference ----------------------------

def reference_forward(params, x):
    B, S, _ = x.shape
    d = params["model_dim"]
    H = params["num_heads"]
    dh = d // H

    def ln(y, g, b):
        m = jnp.mean(y, axis=-1, keepdims=True)
        v = jnp.mean((y - m) ** 2, axis=-1, keepdims=True)
        return (y - m) * lax.rsqrt(v + 1e-5) * g + b

    h = x.reshape(B * S, -1) @ params["in_w"] + params["in_b"]
    for lp in params["layers"]:
        qkv = h @ lp["in_proj_w"] + lp["in_proj_b"]
        q, k, v = jnp.split(qkv, 3, axis=-1)
        q = q.reshape(B, S, H, dh).transpose(0, 2, 1, 3)
        k = k.reshape(B, S, H, dh).transpose(0, 2, 1, 3)
        v = v.reshape(B, S, H, dh).transpose(0, 2, 1, 3)
        s = jnp.einsum("bhqd,bhkd->bhqk", q, k) / math.sqrt(dh)
        p = jax.nn.softmax(s, axis=-1)
        a = jnp.einsum("bhqk,bhkd->bhqd", p, v).transpose(0, 2, 1, 3)
        a = a.reshape(B * S, d) @ lp["out_proj_w"] + lp["out_proj_b"]
        h = ln(h + a, lp["ln1_g"], lp["ln1_b"])
        ff = jnp.maximum(h @ lp["ff1_w"] + lp["ff1_b"], 0.0)
        ff = ff @ lp["ff2_w"] + lp["ff2_b"]
        h = ln(h + ff, lp["ln2_g"], lp["ln2_b"])
    last = h.reshape(B, S, d)[:, -1, :]
    return last @ params["out_w"] + params["out_b"]


# ----------------------------------- main --------------------------------------

if __name__ == "__main__":
    # Small shapes consistent with the module's forward: x is (batch, seq, input_dim).
    B, S = 2, 8
    input_dim, model_dim, num_heads, num_layers = 4, 32, 4, 2
    dropout = 0.1  # inactive in forward (eval mode)

    key = jax.random.PRNGKey(0)
    kx, kp = jax.random.split(key)
    x = jax.random.normal(kx, (B, S, input_dim), jnp.float32)
    params = init_params(kp, input_dim, model_dim, num_heads, num_layers)

    out = jax.block_until_ready(temporal_transformer_forward(params, x))
    ref = jax.block_until_ready(reference_forward(params, x))

    assert out.shape == (B, 1), out.shape
    # Tolerance covers the approx (EUP) reciprocal used for the softmax denom.
    assert jnp.allclose(out, ref, atol=2e-3, rtol=2e-3), (out, ref)
    print("KERNEL_OK")
</pallas_src>

<mosaic_0001>
module attributes {stable_mosaic.version = 11 : i64} {
  func.func @_linear_kernel(%arg0: i32, %arg1: i32, %arg2: i32, %arg3: memref<16x4xf32, #tpu.memory_space<vmem>>, %arg4: memref<4x32xf32, #tpu.memory_space<vmem>>, %arg5: memref<1x32xf32, #tpu.memory_space<vmem>>, %arg6: memref<16x32xf32, #tpu.memory_space<vmem>>, %arg7: memref<16x32xf32, #tpu.memory_space<vmem>>) attributes {dimension_semantics = [#tpu.dimension_semantics<parallel>, #tpu.dimension_semantics<parallel>, #tpu.dimension_semantics<arbitrary>], iteration_bounds = array<i64: 1, 1, 1>, scalar_prefetch = 0 : i64, scratch_operands = 1 : i64, tpu.core_type = #tpu.core_type<tc>, window_params = [{transform_indices = @transform_0, window_bounds = array<i64: 16, 4>}, {transform_indices = @transform_1, window_bounds = array<i64: 4, 32>}, {transform_indices = @transform_2, window_bounds = array<i64: 1, 32>}, {transform_indices = @transform_3, window_bounds = array<i64: 16, 32>}]} {
    %c0_i32 = arith.constant 0 : i32
    %0 = arith.cmpi eq, %arg2, %c0_i32 : i32
    %1 = arith.extui %0 : i1 to i32
    %c0_i32_0 = arith.constant 0 : i32
    %2 = arith.cmpi ne, %1, %c0_i32_0 : i32
    scf.if %2 {
      %cst_10 = arith.constant 0.000000e+00 : f32
      %12 = vector.broadcast %cst_10 : f32 to vector<16x32xf32>
      %c0_11 = arith.constant 0 : index
      %c0_12 = arith.constant 0 : index
      %13 = vector.load %arg7[%c0_11, %c0_12] : memref<16x32xf32, #tpu.memory_space<vmem>>, vector<16x32xf32>
      tpu.vector_store %arg7[%c0_11, %c0_12], %12 {strides = array<i32>} : memref<16x32xf32, #tpu.memory_space<vmem>>, vector<16x32xf32>,
    } else {
    }
    %c0 = arith.constant 0 : index
    %c0_1 = arith.constant 0 : index
    %3 = vector.load %arg7[%c0, %c0_1] : memref<16x32xf32, #tpu.memory_space<vmem>>, vector<16x32xf32>
    %c0_2 = arith.constant 0 : index
    %c0_3 = arith.constant 0 : index
    %4 = vector.load %arg3[%c0_2, %c0_3] : memref<16x4xf32, #tpu.memory_space<vmem>>, vector<16x4xf32>
    %c0_4 = arith.constant 0 : index
    %c0_5 = arith.constant 0 : index
    %5 = vector.load %arg4[%c0_4, %c0_5] : memref<4x32xf32, #tpu.memory_space<vmem>>, vector<4x32xf32>
    %cst = arith.constant dense<0.000000e+00> : vector<16x32xf32>
    %6 = tpu.matmul %4, %5, %cst {dimension_numbers = #tpu.dot_dimension_numbers<[1], [0], [0], [1], [0, 0, 1, 1], [], []>} : vector<16x4xf32>, vector<4x32xf32>, vector<16x32xf32> -> vector<16x32xf32>
    %7 = arith.addf %3, %6 : vector<16x32xf32>
    %c0_6 = arith.constant 0 : index
    %c0_7 = arith.constant 0 : index
    %8 = vector.load %arg7[%c0_6, %c0_7] : memref<16x32xf32, #tpu.memory_space<vmem>>, vector<16x32xf32>
    tpu.vector_store %arg7[%c0_6, %c0_7], %7 {strides = array<i32>} : memref<16x32xf32, #tpu.memory_space<vmem>>, vector<16x32xf32>,
    %c0_i32_8 = arith.constant 0 : i32
    %9 = arith.cmpi eq, %arg2, %c0_i32_8 : i32
    %10 = arith.extui %9 : i1 to i32
    %c0_i32_9 = arith.constant 0 : i32
    %11 = arith.cmpi ne, %10, %c0_i32_9 : i32
    scf.if %11 {
      %c0_10 = arith.constant 0 : index
      %c0_11 = arith.constant 0 : index
      %12 = vector.load %arg7[%c0_10, %c0_11] : memref<16x32xf32, #tpu.memory_space<vmem>>, vector<16x32xf32>
      %c0_12 = arith.constant 0 : index
      %c0_13 = arith.constant 0 : index
      %13 = vector.load %arg5[%c0_12, %c0_13] : memref<1x32xf32, #tpu.memory_space<vmem>>, vector<1x32xf32>
      %14 = vector.broadcast %13 : vector<1x32xf32> to vector<16x32xf32>
      %15 = arith.addf %12, %14 : vector<16x32xf32>
      %c0_14 = arith.constant 0 : index
      %c0_15 = arith.constant 0 : index
      %16 = vector.load %arg7[%c0_14, %c0_15] : memref<16x32xf32, #tpu.memory_space<vmem>>, vector<16x32xf32>
      tpu.vector_store %arg7[%c0_14, %c0_15], %15 {strides = array<i32>} : memref<16x32xf32, #tpu.memory_space<vmem>>, vector<16x32xf32>,
      %c0_16 = arith.constant 0 : index
      %c0_17 = arith.constant 0 : index
      %17 = vector.load %arg7[%c0_16, %c0_17] : memref<16x32xf32, #tpu.memory_space<vmem>>, vector<16x32xf32>
      %c0_18 = arith.constant 0 : index
      %c0_19 = arith.constant 0 : index
      %18 = vector.load %arg6[%c0_18, %c0_19] : memref<16x32xf32, #tpu.memory_space<vmem>>, vector<16x32xf32>
      tpu.vector_store %arg6[%c0_18, %c0_19], %17 {strides = array<i32>} : memref<16x32xf32, #tpu.memory_space<vmem>>, vector<16x32xf32>,
    } else {
    }
    return
  }
  func.func @transform_0(%arg0: i32, %arg1: i32, %arg2: i32) -> (i32, i32) {
    %c0_i32 = arith.constant 0 : i32
    return %arg0, %arg2 : i32, i32
  }
  func.func @transform_1(%arg0: i32, %arg1: i32, %arg2: i32) -> (i32, i32) {
    %c0_i32 = arith.constant 0 : i32
    return %arg2, %arg1 : i32, i32
  }
  func.func @transform_2(%arg0: i32, %arg1: i32, %arg2: i32) -> (i32, i32) {
    %c0_i32 = arith.constant 0 : i32
    %c0_i32_0 = arith.constant 0 : i32
    return %c0_i32, %arg1 : i32, i32
  }
  func.func @transform_3(%arg0: i32, %arg1: i32, %arg2: i32) -> (i32, i32) {
    %c0_i32 = arith.constant 0 : i32
    return %arg0, %arg1 : i32, i32
  }
}

</mosaic_0001>

<bundles_post_ra>
// kernel: tpu_custom_call.1
= control target key start
LH: loop header
LB: loop body
LE: loop exit
PB: predicated region body
PF: predicated region fallthrough
CT: control target
= control target key end

     0   :  { %vm34_vm0 = vcmask 1043456   ;;  %vm27_vm1 = vcmask 31744   ;;  %vm19_vm2 = vcmask 261120   ;;  %s183_s0 = inlined_call_operand.vmem [shape: f32[16,4], index: 0, kind: input, shape index: {}]   ;;  %s184_s1 = inlined_call_operand.vmem [shape: f32[4,32], index: 1, kind: input, shape index: {}]   ;;  %s185_s2 = inlined_call_operand.vmem [shape: f32[1,32], index: 2, kind: input, shape index: {}]   ;;  %s186_s3 = inlined_call_operand.hbm [shape: f32[16,32], index: 3, kind: output, shape index: {}]  }
   0x1   :  { %v26_v0 = vld [vmem:[%s184_s1] sm:$0xf]  ;;  %v25_v2 = vld [vmem:[%s183_s0 + $0x8] sm:$0xff] }
   0x2   :  { %v24_v1 = vld [vmem:[%s183_s0] sm:$0xff]  ;;  %101 = vmatpush.msk.msra.mxu0 %vm34_vm0, %v26_v0  ;;  %104 = vmatpush.msk.msra.mxu1 %vm34_vm0, %v26_v0 }
   0x3   :  { %8 = vsyncpa [#allocation4], 0  ;;  %102 = vmatmul.msk.f32.vlgmr.msra.gmra.mxu0 %vm27_vm1, %v24_v1  ;;  %103 = vmatmul.msk.f32.vlgmr.msra.gmra.mxu1 %vm27_vm1, %v25_v2  ;;  %v136_v3 = vmov 0.0   ;;  %v109_v10 = vld [vmem:[%s185_s2] ss:$0 sm:$0xff]  ;;  %s137_s18 = smov [#allocation3]  }
   0x4   :  { %20 = vst.msk [vmem:[#allocation2] sm:$0xff] %vm19_vm2, %v136_v3  ;;  %s87_s19 = sshll.u32 %s137_s18, 4  ;;  %s89_s22 = sshll.u32 %s186_s3, 4  ;;  %s88_s19 = int_to_ptr.vmem [resolvable:$true] %s87_s19  ;;  %s90_s22 = int_to_ptr.hbm [resolvable:$true] %s89_s22 }
   0x5   :  { %21 = vst.msk [vmem:[#allocation2 + $0x8] sm:$0xff] %vm19_vm2, %v136_v3  ;;  %s138_s2 = smov 128   ;;  %s139_s23 = smov 8  }
   0xb   :  { %v22_v4 = vld [vmem:[#allocation2] sm:$0xff] }
   0xc   :  { %v23_v5 = vld [vmem:[#allocation2 + $0x8] sm:$0xff] }
  0x80   :  { %v55_v6 = vpop.f32.mrf.mxu0  ;;  %v58_v7 = vpop.f32.mrf.mxu1 }
  0x81   :  { %v61_v8 = vadd.f32 %v55_v6, %v22_v4  ;;  %v62_v9 = vadd.f32 %v58_v7, %v23_v5 }
  0x83   :  { %64 = vst.msk [vmem:[#allocation2] sm:$0xff] %vm19_vm2, %v61_v8 }
  0x84   :  { %65 = vst.msk [vmem:[#allocation2 + $0x8] sm:$0xff] %vm19_vm2, %v62_v9 }
  0x8a   :  { %v69_v11 = vld [vmem:[#allocation2] sm:$0xff] }
  0x8b   :  { %v75_v12 = vadd.f32 %v109_v10, %v69_v11  ;;  %v70_v13 = vld [vmem:[#allocation2 + $0x8] sm:$0xff] }
  0x8c   :  { %v76_v14 = vadd.f32 %v109_v10, %v70_v13 }
  0x8d   :  { %77 = vst.msk [vmem:[#allocation2] sm:$0xff] %vm19_vm2, %v75_v12 }
  0x8e   :  { %78 = vst.msk [vmem:[#allocation2 + $0x8] sm:$0xff] %vm19_vm2, %v76_v14 }
  0x94   :  { %v79_v15 = vld [vmem:[#allocation2] sm:$0xff] }
  0x95   :  { %v80_v16 = vld [vmem:[#allocation2 + $0x8] sm:$0xff]  ;;  %81 = vst.msk [vmem:[#allocation3] sm:$0xff] %vm19_vm2, %v79_v15 }
  0x96   :  { %82 = vst.msk [vmem:[#allocation3 + $0x8] sm:$0xff] %vm19_vm2, %v80_v16 }
  0x97   :  { %95 = dma.vmem_to_hbm [thread:$0]  %s88_s19, 256, %s90_s22, [#allocation4], %s138_s2, %s138_s2, %s139_s23  }
  0x98   :  { %134 = dma.done.wait [#allocation4], 256  }
  0x99   :  { %135 = vsyncadd [#allocation4], 4294967040 }
  0x9a   :  { %100 = vsyncpa [#allocation4], 1 }

</bundles_post_ra>
